<compile_context>
chip_gen: v7x
topology: tpu7x:2x2x1
jax: 0.10.0
libtpu: 0.0.40
codegen_flags: <defaults>
</compile_context>

<pallas_src>
import jax
import jax.numpy as jnp
from jax.experimental import pallas as pl
from jax.experimental.pallas import tpu as pltpu


# ---------------------------------------------------------------------------
# Kernels
# ---------------------------------------------------------------------------
def _ffn_kernel(x_ref, w1_ref, b1_ref, w2_ref, b2_ref, o_ref, acc_ref):
    ff = pl.program_id(1)

    @pl.when(ff == 0)
    def _():
        acc_ref[...] = jnp.zeros_like(acc_ref)

    # In-kernel cast of the activation tile (hidden under the MXU).
    x = x_ref[...].astype(w1_ref.dtype)
    # h = relu(x @ W1_tile + b1_tile) -- bias add and ReLU in f32.
    h = jnp.dot(x, w1_ref[...], preferred_element_type=jnp.float32)
    h = jnp.maximum(h + b1_ref[...], 0.0)
    # TODO(synk): dropout is identity in eval mode; training-mode dropout (RNG mask) not applied.
    acc_ref[...] += jnp.dot(h.astype(w2_ref.dtype), w2_ref[...],
                            preferred_element_type=jnp.float32)

    @pl.when(ff == pl.num_programs(1) - 1)
    def _():
        # b2 is added exactly once, at the final reduction step.
        o_ref[...] = (acc_ref[...] + b2_ref[...]).astype(o_ref.dtype)


def _ffn_gated_kernel(x_ref, w1_ref, b1_ref, wv_ref, bv_ref, w2_ref, b2_ref,
                      o_ref, acc_ref):
    ff = pl.program_id(1)

    @pl.when(ff == 0)
    def _():
        acc_ref[...] = jnp.zeros_like(acc_ref)

    x = x_ref[...].astype(w1_ref.dtype)
    # Gate and value projections for this d_ff tile (two MXU pushes; the d_ff
    # tile is already >= the 256-wide MXU, so fusing them buys nothing and the
    # host-side interleave copy it required has been removed).
    g = jnp.dot(x, w1_ref[...], preferred_element_type=jnp.float32)
    g = jnp.maximum(g + b1_ref[...], 0.0)
    v = jnp.dot(x, wv_ref[...], preferred_element_type=jnp.float32)
    v = v + bv_ref[...]
    # Gate multiply in the MXU operand dtype (the product is cast for matmul 2
    # anyway); note: extra precision loss vs. an f32 PyTorch baseline on the
    # bf16 compute path.
    h = g.astype(w2_ref.dtype) * v.astype(w2_ref.dtype)
    # TODO(synk): dropout is identity in eval mode; training-mode dropout (RNG mask) not applied.
    acc_ref[...] += jnp.dot(h, w2_ref[...], preferred_element_type=jnp.float32)

    @pl.when(ff == pl.num_programs(1) - 1)
    def _():
        o_ref[...] = (acc_ref[...] + b2_ref[...]).astype(o_ref.dtype)


# ---------------------------------------------------------------------------
# Tiling / budget helpers
# ---------------------------------------------------------------------------
def _device_kind():
    try:
        return jax.devices()[0].device_kind.lower()
    except Exception:
        return ""


def _vmem_capacity_bytes():
    try:
        info = pltpu.get_tpu_info()
        cap = getattr(info, "vmem_capacity_bytes", None)
        if cap:
            return int(cap)
    except Exception:
        pass
    # Fallback from device kind: v7x has 64 MiB/TC, v5e/v6e have 128 MiB.
    return (64 if "v7" in _device_kind() else 128) * 1024 * 1024


def _default_tiles(is_gated):
    """Generation-aware token / d_ff tile targets (above each chip's HBM ridge)."""
    kind = _device_kind()
    if "v7" in kind:
        # 64 MiB VMEM: smaller d_ff tile on the gated path (extra Wv buffer).
        return 512, (256 if is_gated else 512)
    if "v6" in kind:
        return 1024, 512
    if "v5" in kind:
        return 512, 512
    return 512, 512


def _choose_ff_tile(d_ff, target):
    """Largest 128-multiple d_ff tile <= target that divides d_ff, else full extent."""
    if d_ff <= target or d_ff % 128 != 0:
        return d_ff
    target = max(128, (target // 128) * 128)
    for t in range(target, 127, -128):
        if d_ff % t == 0:
            return t
    return d_ff


def _choose_token_tile(n_tokens, target):
    if n_tokens <= 8:
        return n_tokens
    tm = min(max(8, (target // 8) * 8), n_tokens)
    tm = max(8, (tm // 8) * 8)
    # Keep >= 2 token tiles so the "parallel" axis shards across v7x's 2 TCs.
    if pl.cdiv(n_tokens, tm) < 2:
        half = max(8, ((pl.cdiv(n_tokens, 2) + 7) // 8) * 8)
        if half < n_tokens:
            tm = half
    return tm


def _vmem_estimate(tm, tf, d_model, x_itemsize, w_itemsize, out_itemsize, is_gated):
    n_w1 = 2 if is_gated else 1
    return (2 * tm * d_model * x_itemsize                  # x tile (double-buffered)
            + 2 * n_w1 * d_model * tf * w_itemsize         # W1 (+ Wv) tiles
            + 2 * tf * d_model * w_itemsize                # W2 tile
            + 2 * tm * d_model * out_itemsize              # output tile
            + tm * d_model * 4                             # f32 accumulator
            + 8 * (n_w1 * tf + d_model) * 4)               # biases (padded, generous)


# ---------------------------------------------------------------------------
# Public entry points
# ---------------------------------------------------------------------------
def prepare_params(params, *, compute_dtype=jnp.bfloat16):
    """Pre-cast weights/biases ONCE (hoists per-call HBM weight copies out of the hot path)."""
    cdt = jnp.dtype(compute_dtype)
    out = {}
    for k, v in params.items():
        if k.startswith("w"):
            out[k] = v.astype(cdt)
        else:
            out[k] = v.astype(jnp.float32)
    return out


def feed_forward(x, params, *, is_gated=False, tile_m=None, tile_ff=None,
                 compute_dtype=jnp.bfloat16):
    """x: (batch, seq, d_model). Returns (batch, seq, d_model) in x.dtype.

    tile_m / tile_ff default to generation-aware values (v5e/v7x: 512, v6e: 1024
    token rows; 512 d_ff columns, 256 for gated on v7x) so the kernel sits above
    the HBM ridge. compute_dtype is the MXU operand dtype (bf16 recommended on
    v6e/v7x); accumulation and bias/ReLU stay in f32.
    """
    B, S, d_model = x.shape
    d_ff = params["w1"].shape[1]
    N = B * S
    x2d = x.reshape(N, d_model)           # reshape only; no dtype copy in the wrapper

    cdt = jnp.dtype(compute_dtype)
    x_itemsize = jnp.dtype(x.dtype).itemsize
    w_itemsize = cdt.itemsize

    def _ensure(arr, dt):
        return arr if arr.dtype == dt else arr.astype(dt)

    w1 = _ensure(params["w1"], cdt)
    w2 = _ensure(params["w2"], cdt)
    b1 = _ensure(params["b1"], jnp.float32)
    b2 = _ensure(params["b2"], jnp.float32)

    # ---- tile selection (generation-aware) + VMEM-budgeted shrink ----------
    def_tm, def_tf = _default_tiles(is_gated)
    if tile_m is None:
        tile_m = def_tm
    if tile_ff is None:
        tile_ff = def_tf

    tm = _choose_token_tile(N, tile_m)
    tf = _choose_ff_tile(d_ff, tile_ff)

    vmem_cap = _vmem_capacity_bytes()
    vmem_limit = max(min(int(0.78 * vmem_cap), 100 * 1024 * 1024), 32 * 1024 * 1024)
    budget = int(0.9 * vmem_limit)

    while _vmem_estimate(tm, tf, d_model, x_itemsize, w_itemsize,
                         x_itemsize, is_gated) > budget:
        # Shrink the d_ff tile first (does not change HBM traffic / AI) ...
        if tf > 128:
            new_tf = _choose_ff_tile(d_ff, tf // 2)
            if new_tf < tf:
                tf = new_tf
                continue
        # ... then the token tile (costs AI, so only when forced).
        if tm > 8:
            tm = max(8, ((tm // 2) // 8) * 8)
            continue
        break

    grid_m = pl.cdiv(N, tm)
    grid_ff = d_ff // tf

    # ---- specs --------------------------------------------------------------
    # NOTE: keep d_model a multiple of 128 in production so the output lane axis
    # is dense (unmasked vst); the tiny demo shapes below are not.
    x_spec = pl.BlockSpec((tm, d_model), lambda i, f: (i, 0))
    w1_spec = pl.BlockSpec((d_model, tf), lambda i, f: (0, f))
    b1_spec = pl.BlockSpec((1, tf), lambda i, f: (0, f))
    w2_spec = pl.BlockSpec((tf, d_model), lambda i, f: (f, 0))
    b2_spec = pl.BlockSpec((1, d_model), lambda i, f: (0, 0))
    o_spec = pl.BlockSpec((tm, d_model), lambda i, f: (i, 0))
    # TODO(synk): if VMEM is the limiter after raising tm on v7x, x_spec/o_spec
    # could take pipeline_mode=pl.Buffered(1) (their block only changes on the
    # outer axis) to reclaim ~2*tm*d_model bytes each.

    n_mm = 3 if is_gated else 2
    flops = 2 * N * d_model * d_ff * n_mm
    bytes_accessed = (
        N * d_model * 2 * x_itemsize                       # x read + y write
        + grid_m * (n_mm * d_model * d_ff) * w_itemsize    # weights re-streamed per token tile
        + grid_m * ((n_mm - 1) * d_ff + d_model) * 4       # biases
    )
    cost = pl.CostEstimate(flops=flops, transcendentals=0,
                           bytes_accessed=int(bytes_accessed))

    compiler_params = pltpu.CompilerParams(
        dimension_semantics=("parallel", "arbitrary"),
        vmem_limit_bytes=vmem_limit,
    )
    scratch = [pltpu.VMEM((tm, d_model), jnp.float32)]

    if is_gated:
        wv = _ensure(params["wv"], cdt)
        bv = _ensure(params["bv"], jnp.float32)
        wv_spec = pl.BlockSpec((d_model, tf), lambda i, f: (0, f))
        bv_spec = pl.BlockSpec((1, tf), lambda i, f: (0, f))
        out = pl.pallas_call(
            _ffn_gated_kernel,
            out_shape=jax.ShapeDtypeStruct((N, d_model), x.dtype),
            grid_spec=pltpu.PrefetchScalarGridSpec(
                num_scalar_prefetch=0,
                grid=(grid_m, grid_ff),
                in_specs=[x_spec, w1_spec, b1_spec, wv_spec, bv_spec,
                          w2_spec, b2_spec],
                out_specs=o_spec,
                scratch_shapes=scratch,
            ),
            compiler_params=compiler_params,
            cost_estimate=cost,
        )(x2d, w1, b1, wv, bv, w2, b2)
    else:
        out = pl.pallas_call(
            _ffn_kernel,
            out_shape=jax.ShapeDtypeStruct((N, d_model), x.dtype),
            grid_spec=pltpu.PrefetchScalarGridSpec(
                num_scalar_prefetch=0,
                grid=(grid_m, grid_ff),
                in_specs=[x_spec, w1_spec, b1_spec, w2_spec, b2_spec],
                out_specs=o_spec,
                scratch_shapes=scratch,
            ),
            compiler_params=compiler_params,
            cost_estimate=cost,
        )(x2d, w1, b1, w2, b2)

    return out.reshape(B, S, d_model)


# ---------------------------------------------------------------------------
# Reference + init (host-side helpers)
# ---------------------------------------------------------------------------
def init_params(key, d_model, d_ff, is_gated=False, dtype=jnp.float32):
    """Deterministic init mimicking nn.Linear's uniform(-1/sqrt(fan_in), 1/sqrt(fan_in))."""
    ks = jax.random.split(key, 6)
    lim1 = 1.0 / jnp.sqrt(d_model)
    lim2 = 1.0 / jnp.sqrt(d_ff)
    params = {
        # stored as (in, out) so the kernel does x @ W
        "w1": jax.random.uniform(ks[0], (d_model, d_ff), dtype, -lim1, lim1),
        "b1": jax.random.uniform(ks[1], (1, d_ff), dtype, -lim1, lim1),
        "w2": jax.random.uniform(ks[2], (d_ff, d_model), dtype, -lim2, lim2),
        "b2": jax.random.uniform(ks[3], (1, d_model), dtype, -lim2, lim2),
    }
    if is_gated:
        params["wv"] = jax.random.uniform(ks[4], (d_model, d_ff), dtype, -lim1, lim1)
        params["bv"] = jax.random.uniform(ks[5], (1, d_ff), dtype, -lim1, lim1)
    return params


def feed_forward_ref(x, params, *, is_gated=False):
    """Plain-JAX reference matching the PyTorch forward (eval mode dropout = identity)."""
    g = jnp.maximum(x @ params["w1"] + params["b1"][0], 0.0)
    if is_gated:
        h = g * (x @ params["wv"] + params["bv"][0])
    else:
        h = g
    return h @ params["w2"] + params["b2"][0]


if __name__ == "__main__":
    key = jax.random.PRNGKey(0)
    k_x, k_p, k_pg = jax.random.split(key, 3)

    batch, seq, d_model, d_ff = 2, 8, 32, 64
    x = jax.random.normal(k_x, (batch, seq, d_model), jnp.float32)

    # 1) Default module config (is_gated=False, ReLU, biases on), f32 compute path.
    params = init_params(k_p, d_model, d_ff, is_gated=False)
    prepped = prepare_params(params, compute_dtype=jnp.float32)   # hoisted, once
    out = feed_forward(x, prepped, is_gated=False, compute_dtype=jnp.float32)
    out = jax.block_until_ready(out)
    ref = feed_forward_ref(x, params, is_gated=False)
    assert out.shape == (batch, seq, d_model)
    assert jnp.allclose(out, ref, atol=1e-5, rtol=1e-5)

    # 2) Gated config on the bf16 MXU path (looser tolerance for bf16 operands).
    params_g = init_params(k_pg, d_model, d_ff, is_gated=True)
    prepped_g = prepare_params(params_g, compute_dtype=jnp.bfloat16)  # hoisted, once
    out_g = feed_forward(x, prepped_g, is_gated=True, compute_dtype=jnp.bfloat16)
    out_g = jax.block_until_ready(out_g)
    ref_g = feed_forward_ref(x, params_g, is_gated=True)
    assert out_g.shape == (batch, seq, d_model)
    assert jnp.allclose(out_g, ref_g, atol=5e-2, rtol=5e-2)

    print("KERNEL_OK")
</pallas_src>

<mosaic_0001>
module attributes {stable_mosaic.version = 11 : i64} {
  func.func @_ffn_kernel(%arg0: i32, %arg1: i32, %arg2: memref<8x32xf32, #tpu.memory_space<vmem>>, %arg3: memref<32x64xf32, #tpu.memory_space<vmem>>, %arg4: memref<1x64xf32, #tpu.memory_space<vmem>>, %arg5: memref<64x32xf32, #tpu.memory_space<vmem>>, %arg6: memref<1x32xf32, #tpu.memory_space<vmem>>, %arg7: memref<8x32xf32, #tpu.memory_space<vmem>>, %arg8: memref<8x32xf32, #tpu.memory_space<vmem>>) attributes {dimension_semantics = [#tpu.dimension_semantics<parallel>, #tpu.dimension_semantics<arbitrary>], iteration_bounds = array<i64: 2, 1>, scalar_prefetch = 0 : i64, scratch_operands = 1 : i64, tpu.core_type = #tpu.core_type<tc>, window_params = [{transform_indices = @transform_0, window_bounds = array<i64: 8, 32>}, {transform_indices = @transform_1, window_bounds = array<i64: 32, 64>}, {transform_indices = @transform_2, window_bounds = array<i64: 1, 64>}, {transform_indices = @transform_3, window_bounds = array<i64: 64, 32>}, {pipeline_mode = #tpu.pipeline_mode<synchronous>, transform_indices = @transform_4, window_bounds = array<i64: 1, 32>}, {transform_indices = @transform_5, window_bounds = array<i64: 8, 32>}]} {
    %c0_i32 = arith.constant 0 : i32
    %0 = arith.cmpi eq, %arg1, %c0_i32 : i32
    %1 = arith.extui %0 : i1 to i32
    %c0_i32_0 = arith.constant 0 : i32
    %2 = arith.cmpi ne, %1, %c0_i32_0 : i32
    scf.if %2 {
      %cst_16 = arith.constant 0.000000e+00 : f32
      %19 = vector.broadcast %cst_16 : f32 to vector<8x32xf32>
      %c0_17 = arith.constant 0 : index
      %c0_18 = arith.constant 0 : index
      %20 = vector.load %arg8[%c0_17, %c0_18] : memref<8x32xf32, #tpu.memory_space<vmem>>, vector<8x32xf32>
      tpu.vector_store %arg8[%c0_17, %c0_18], %19 {strides = array<i32>} : memref<8x32xf32, #tpu.memory_space<vmem>>, vector<8x32xf32>,
    } else {
    }
    %c0 = arith.constant 0 : index
    %c0_1 = arith.constant 0 : index
    %3 = vector.load %arg2[%c0, %c0_1] : memref<8x32xf32, #tpu.memory_space<vmem>>, vector<8x32xf32>
    %c0_2 = arith.constant 0 : index
    %c0_3 = arith.constant 0 : index
    %4 = vector.load %arg3[%c0_2, %c0_3] : memref<32x64xf32, #tpu.memory_space<vmem>>, vector<32x64xf32>
    %cst = arith.constant dense<0.000000e+00> : vector<8x64xf32>
    %5 = tpu.matmul %3, %4, %cst {dimension_numbers = #tpu.dot_dimension_numbers<[1], [0], [0], [1], [0, 0, 1, 1], [], []>} : vector<8x32xf32>, vector<32x64xf32>, vector<8x64xf32> -> vector<8x64xf32>
    %c0_4 = arith.constant 0 : index
    %c0_5 = arith.constant 0 : index
    %6 = vector.load %arg4[%c0_4, %c0_5] : memref<1x64xf32, #tpu.memory_space<vmem>>, vector<1x64xf32>
    %7 = vector.broadcast %6 : vector<1x64xf32> to vector<8x64xf32>
    %8 = arith.addf %5, %7 : vector<8x64xf32>
    %cst_6 = arith.constant 0.000000e+00 : f32
    %9 = vector.broadcast %cst_6 : f32 to vector<8x64xf32>
    %10 = arith.maximumf %8, %9 : vector<8x64xf32>
    %c0_7 = arith.constant 0 : index
    %c0_8 = arith.constant 0 : index
    %11 = vector.load %arg8[%c0_7, %c0_8] : memref<8x32xf32, #tpu.memory_space<vmem>>, vector<8x32xf32>
    %c0_9 = arith.constant 0 : index
    %c0_10 = arith.constant 0 : index
    %12 = vector.load %arg5[%c0_9, %c0_10] : memref<64x32xf32, #tpu.memory_space<vmem>>, vector<64x32xf32>
    %cst_11 = arith.constant dense<0.000000e+00> : vector<8x32xf32>
    %13 = tpu.matmul %10, %12, %cst_11 {dimension_numbers = #tpu.dot_dimension_numbers<[1], [0], [0], [1], [0, 0, 1, 1], [], []>} : vector<8x64xf32>, vector<64x32xf32>, vector<8x32xf32> -> vector<8x32xf32>
    %14 = arith.addf %11, %13 : vector<8x32xf32>
    %c0_12 = arith.constant 0 : index
    %c0_13 = arith.constant 0 : index
    %15 = vector.load %arg8[%c0_12, %c0_13] : memref<8x32xf32, #tpu.memory_space<vmem>>, vector<8x32xf32>
    tpu.vector_store %arg8[%c0_12, %c0_13], %14 {strides = array<i32>} : memref<8x32xf32, #tpu.memory_space<vmem>>, vector<8x32xf32>,
    %c0_i32_14 = arith.constant 0 : i32
    %16 = arith.cmpi eq, %arg1, %c0_i32_14 : i32
    %17 = arith.extui %16 : i1 to i32
    %c0_i32_15 = arith.constant 0 : i32
    %18 = arith.cmpi ne, %17, %c0_i32_15 : i32
    scf.if %18 {
      %c0_16 = arith.constant 0 : index
      %c0_17 = arith.constant 0 : index
      %19 = vector.load %arg8[%c0_16, %c0_17] : memref<8x32xf32, #tpu.memory_space<vmem>>, vector<8x32xf32>
      %c0_18 = arith.constant 0 : index
      %c0_19 = arith.constant 0 : index
      %20 = vector.load %arg6[%c0_18, %c0_19] : memref<1x32xf32, #tpu.memory_space<vmem>>, vector<1x32xf32>
      %21 = vector.broadcast %20 : vector<1x32xf32> to vector<8x32xf32>
      %22 = arith.addf %19, %21 : vector<8x32xf32>
      %c0_20 = arith.constant 0 : index
      %c0_21 = arith.constant 0 : index
      %23 = vector.load %arg7[%c0_20, %c0_21] : memref<8x32xf32, #tpu.memory_space<vmem>>, vector<8x32xf32>
      tpu.vector_store %arg7[%c0_20, %c0_21], %22 {strides = array<i32>} : memref<8x32xf32, #tpu.memory_space<vmem>>, vector<8x32xf32>,
    } else {
    }
    return
  }
  func.func @transform_0(%arg0: i32, %arg1: i32) -> (i32, i32) {
    %c0_i32 = arith.constant 0 : i32
    %c0_i32_0 = arith.constant 0 : i32
    return %arg0, %c0_i32 : i32, i32
  }
  func.func @transform_1(%arg0: i32, %arg1: i32) -> (i32, i32) {
    %c0_i32 = arith.constant 0 : i32
    %c0_i32_0 = arith.constant 0 : i32
    return %c0_i32, %arg1 : i32, i32
  }
  func.func @transform_2(%arg0: i32, %arg1: i32) -> (i32, i32) {
    %c0_i32 = arith.constant 0 : i32
    %c0_i32_0 = arith.constant 0 : i32
    return %c0_i32, %arg1 : i32, i32
  }
  func.func @transform_3(%arg0: i32, %arg1: i32) -> (i32, i32) {
    %c0_i32 = arith.constant 0 : i32
    %c0_i32_0 = arith.constant 0 : i32
    return %arg1, %c0_i32 : i32, i32
  }
  func.func @transform_4(%arg0: i32, %arg1: i32) -> (i32, i32) {
    %c0_i32 = arith.constant 0 : i32
    %c0_i32_0 = arith.constant 0 : i32
    %c0_i32_1 = arith.constant 0 : i32
    return %c0_i32, %c0_i32_0 : i32, i32
  }
  func.func @transform_5(%arg0: i32, %arg1: i32) -> (i32, i32) {
    %c0_i32 = arith.constant 0 : i32
    %c0_i32_0 = arith.constant 0 : i32
    return %arg0, %c0_i32 : i32, i32
  }
}

</mosaic_0001>

<bundles_post_ra>
// kernel: tpu_custom_call.1
= control target key start
LH: loop header
LB: loop body
LE: loop exit
PB: predicated region body
PF: predicated region fallthrough
CT: control target
= control target key end

     0   :  { %10 = vsyncpa [#allocation4], 0  ;;  %s1432_s0 = inlined_call_operand.hbm [shape: f32[16,32], index: 0, kind: input, shape index: {}]   ;;  %s1433_s1 = inlined_call_operand.hbm [shape: f32[32,64], index: 1, kind: input, shape index: {}]   ;;  %s1434_s2 = inlined_call_operand.hbm [shape: f32[1,64], index: 2, kind: input, shape index: {}]   ;;  %s1435_s3 = inlined_call_operand.hbm [shape: f32[64,32], index: 3, kind: input, shape index: {}]   ;;  %s1436_s4 = inlined_call_operand.hbm [shape: f32[1,32], index: 4, kind: input, shape index: {}]   ;;  %s1437_s5 = inlined_call_operand.hbm [shape: f32[16,32], index: 5, kind: output, shape index: {}]  }
   0x1   :  { %12 = vsyncpa [#allocation4 + $0x1], 0 }
   0x2   :  { %13 = vsyncpa [#allocation7], 0 }
   0x3   :  { %14 = vsyncpa [#allocation10], 0 }
   0x4   :  { %15 = vsyncpa [#allocation5], 0 }
   0x5   :  { %17 = vsyncpa [#allocation5 + $0x1], 0  ;;  %s1126_s18 = smov 0   ;;  %s1128_s19 = smov 0  }
   0x6   :  { %s1130_s20 = smov 0   ;;  %s1132_s21 = smov 0  }
   0x7   :  { %s1134_s22 = smov 0   ;;  %s1136_s23 = smov 0  }
   0x8 LB: > { %s656_s24 = sadd.s32 4294967295, %s1083_s23   ;;  %p658_p0 = scmp.ge.s32.totalorder %s1083_s23, 1  ;;  %s1083_s23 = sphi %s1136_s23, %s23_s23   ;;  %s1079_s22 = sphi %s1134_s22, %s1461_s22   ;;  %s1075_s21 = sphi %s1132_s21, %s1460_s21   ;;  %s1071_s20 = sphi %s1130_s20, %s1459_s20   ;;  %s1067_s19 = sphi %s1128_s19, %s1458_s19   ;;  %s1063_s18 = sphi %s1126_s18, %s1457_s18  }
   0x9   : > { %p1160_p1 = scmp.eq.s32.totalorder %s656_s24, 0  ;;  %p191_p2 = scmp.lt.s32.totalorder %s1083_s23, 3 }
   0xa   : > { %s1085_s27 = smov [#allocation6]   ;;  %s1086_s30 = smov [#allocation9]  }
   0xb   : > { %s1442_s25 = scalar_select %p1160_p1, 1, 0 }
   0xc   : > { %p1165_p3 = pnand %p658_p0, %p191_p2  ;;  %s205_s28 = sshll.u32 %s1085_s27, 4  ;;  %s1169_s28 = int_to_ptr.vmem [resolvable:$true] %s205_s28 }
   0xd   : > { %s234_s6 = sshll.u32 %s1086_s30, 4  ;;  %s1087_s7 = smov [#allocation8]   ;;  %s1180_s6 = int_to_ptr.vmem [resolvable:$true] %s234_s6 }
   0xe   : > { %s1443_s26 = scalar_select %p1165_p3, 1, 0 }
   0xf   : > { %p763_p4 = pneg %p1165_p3  ;;  %s1182_s8 = sshll.u32 %s1087_s7, 4  ;;  %s222_s8 = int_to_ptr.vmem [resolvable:$true] %s1182_s8 }
  0x10   : > { %s851_s11 = scalar_lea.hbm %s1433_s1, 512 }
  0x11   : > { %p1176_p6 = pnand %p763_p4, %p1160_p1  ;;  %p852_p7 = scmp.ne.s32.totalorder %s1433_s1, %s851_s11 }
  0x12   : > { %p858_p11 = scmp.lt.u32.totalorder %s851_s11, %s1433_s1 }
  0x13   : > { %p1192_p8 = pneg %p1176_p6 }
  0x15   : > { %p854_p9 = pnand %p1192_p8, %p852_p7 }
  0x17   : > { %p855_p10 = pneg %p854_p9 }
  0x19   : > { %p860_p12 = pnand %p858_p11, %p855_p10 }
  0x1b   : > { %863 = shalt.err (!%p860_p12)
}
  0x1c   : > { %s864_s17 = scalar_lea.vmem %s1169_s28, 512  ;;  %p872_p4 = scmp.lt.s32.totalorder %s1169_s28, %s1169_s28 }
  0x1d   : > { %p865_p13 = scmp.ne.s32.totalorder %s1169_s28, %s864_s17  ;;  %p873_p5 = scmp.lt.s32.totalorder %s864_s17, %s864_s17 }
  0x1f   : > { %p867_p0 = pnand %p865_p13, %p1192_p8  ;;  %p874_p7 = por %p873_p5, %p872_p4 }
  0x21   : > { %p868_p2 = pneg %p867_p0 }
  0x23   : > { %p875_p9 = pnand %p874_p7, %p868_p2 }
  0x25   : > { %878 = shalt.err (!%p875_p9)
}
  0x26   : > { %s1088_s27 = smov 128   ;;  %s1089_s30 = smov 8  }
  0x27   : > { %766 = dma.hbm_to_vmem [thread:$0]  (!%p1176_p6), %s1433_s1, 512, %s1169_s28, [#allocation7], %s1088_s27, %s1088_s27, %s1089_s30  }
  0x28   : > { %s879_s12 = scalar_lea.hbm %s1435_s3, 1024 }
  0x29   : > { %p880_p5 = scmp.ne.s32.totalorder %s1435_s3, %s879_s12  ;;  %p886_p12 = scmp.lt.u32.totalorder %s879_s12, %s1435_s3 }
  0x2b   : > { %p882_p10 = pnand %p880_p5, %p1192_p8 }
  0x2d   : > { %p883_p11 = pneg %p882_p10 }
  0x2f   : > { %p888_p13 = pnand %p886_p12, %p883_p11 }
  0x31   : > { %891 = shalt.err (!%p888_p13)
}
  0x32   : > { %s892_s28 = scalar_lea.vmem %s1180_s6, 1024  ;;  %p900_p7 = scmp.lt.s32.totalorder %s1180_s6, %s1180_s6 }
  0x33   : > { %p893_p0 = scmp.ne.s32.totalorder %s1180_s6, %s892_s28  ;;  %p901_p9 = scmp.lt.s32.totalorder %s892_s28, %s892_s28 }
  0x35   : > { %p895_p2 = pnand %p893_p0, %p1192_p8  ;;  %p902_p5 = por %p901_p9, %p900_p7 }
  0x37   : > { %p896_p4 = pneg %p895_p2 }
  0x39   : > { %p903_p10 = pnand %p902_p5, %p896_p4 }
  0x3b   : > { %906 = shalt.err (!%p903_p10)
}
  0x3c   : > { %772 = dma.hbm_to_vmem [thread:$0]  (!%p1176_p6), %s1435_s3, 1024, %s1180_s6, [#allocation10], %s1088_s27, %s1088_s27, %s1089_s30  }
  0x3d   : > { %s907_s12 = scalar_lea.hbm %s1434_s2, 16 }
  0x3e   : > { %p908_p11 = scmp.ne.s32.totalorder %s1434_s2, %s907_s12  ;;  %p914_p0 = scmp.lt.u32.totalorder %s907_s12, %s1434_s2 }
  0x40   : > { %p910_p12 = pnand %p908_p11, %p1192_p8 }
  0x42   : > { %p911_p13 = pneg %p910_p12 }
  0x44   : > { %p916_p2 = pnand %p914_p0, %p911_p13 }
  0x46   : > { %919 = shalt.err (!%p916_p2)
}
  0x47   : > { %s920_s28 = scalar_lea.vmem %s222_s8, 16  ;;  %s927_s6 = scalar_lea.vmem %s222_s8, 32 }
  0x48   : > { %p921_p4 = scmp.ne.s32.totalorder %s222_s8, %s920_s28  ;;  %p928_p5 = scmp.lt.s32.totalorder %s222_s8, %s222_s8 }
  0x49   : > { %p929_p10 = scmp.lt.s32.totalorder %s927_s6, %s920_s28 }
  0x4a   : > { %p923_p7 = pnand %p921_p4, %p1192_p8 }
  0x4b   : > { %p930_p3 = por %p929_p10, %p928_p5 }
  0x4c   : > { %p924_p9 = pneg %p923_p7 }
  0x4e   : > { %p931_p1 = pnand %p930_p3, %p924_p9 }
  0x50   : > { %934 = shalt.err (!%p931_p1)
}
  0x51   : > { %769 = dma.hbm_to_vmem [thread:$0]  (!%p1176_p6), %s1434_s2, 16, %s222_s8, [#allocation7]  }
  0x52   : > { %s1090_s7 = smov [#allocation11]   ;;  %s935_s12 = scalar_lea.hbm %s1436_s4, 16 }
  0x53   : > { %s248_s9 = sshll.u32 %s1090_s7, 4  ;;  %p936_p11 = scmp.ne.s32.totalorder %s1436_s4, %s935_s12  ;;  %s249_s9 = int_to_ptr.vmem [resolvable:$true] %s248_s9 }
  0x54   : > { %p942_p12 = scmp.lt.u32.totalorder %s935_s12, %s1436_s4 }
  0x55   : > { %p938_p1 = pnand %p936_p11, %p1192_p8 }
  0x57   : > { %p939_p3 = pneg %p938_p1 }
  0x59   : > { %p944_p13 = pnand %p942_p12, %p939_p3 }
  0x5b   : > { %947 = shalt.err (!%p944_p13)
}
  0x5c   : > { %s948_s8 = scalar_lea.vmem %s249_s9, 16  ;;  %s955_s28 = scalar_lea.vmem %s249_s9, 32 }
  0x5d   : > { %p949_p0 = scmp.ne.s32.totalorder %s249_s9, %s948_s8  ;;  %p956_p7 = scmp.lt.s32.totalorder %s249_s9, %s249_s9 }
  0x5e   : > { %p957_p9 = scmp.lt.s32.totalorder %s955_s28, %s948_s8 }
  0x5f   : > { %p951_p2 = pnand %p949_p0, %p1192_p8 }
  0x60   : > { %p958_p5 = por %p957_p9, %p956_p7 }
  0x61   : > { %p952_p4 = pneg %p951_p2 }
  0x63   : > { %p959_p10 = pnand %p958_p5, %p952_p4 }
  0x65   : > { %962 = shalt.err (!%p959_p10)
}
  0x66   : > { %775 = dma.hbm_to_vmem [thread:$0]  (!%p1176_p6), %s1436_s4, 16, %s249_s9, [#allocation10]  }
  0x67   : > { %s657_s14 = sadd.s32 4294967294, %s1083_s23   ;;  %s35_s30 = sadd.s32 1, %s1079_s22 }
  0x68   : > { %p37_p8 = scmp.ge.s32.totalorder %s35_s30, 2  ;;  %s42_s29 = sadd.s32 1, %s1071_s20 }
  0x69   : > { %p49_p11 = scmp.ne.s32.totalorder %s1071_s20, %s1067_s19  ;;  %p50_p1 = scmp.eq.s32.totalorder %s1083_s23, 0 }
  0x6a   : > { %s1463_s30 = smov (%p37_p8, %s35_s30), 0  ;;  %p55_p12 = scmp.ne.s32.totalorder %s1067_s19, %s1063_s18 }
  0x6b   : > { %p1281_p3 = por %p50_p1, %p49_p11  ;;  %s39_s9 = ssub.s32 %s1079_s22, %s1463_s30 }
  0x6c   : > { %p178_p6 = scmp.eq.s32.totalorder %s656_s24, 1  ;;  %p40_p13 = scmp.eq.s32.totalorder %s39_s9, 0 }
  0x6d   : > { %p1447_p0 = scmp.ne.s32.totalorder %s1442_s25, 0  ;;  %p184_p7 = scmp.eq.s32.totalorder %s657_s14, 1 }
  0x6e   : > { %p1297_p4 = por %p178_p6, %p49_p11  ;;  %p788_p5 = scmp.lt.s32.totalorder %s1083_s23, 2 }
  0x6f   : > { %p1293_p2 = por %p1447_p0, %p55_p12  ;;  %p1304_p9 = por %p184_p7, %p55_p12 }
  0x70   : > { %s1449_s11 = scalar_select %p1297_p4, 1, 0 }
  0x71   : > { %s1302_s12 = scalar_select %p40_p13, %s1071_s20, %s42_s29  }
  0x72   : > { %s1450_s13 = scalar_select %p1304_p9, 1, 0 }
  0x73   : > { %s259_s15 = sand.u32 1, %s1071_s20   ;;  %s665_s24 = sshll.u32 %s1079_s22, 7 }
  0x74   : > { %s664_s16 = sshll.u32 %s259_s15, 3  ;;  %s1314_s28 = scalar_lea.hbm %s1432_s0, %s665_s24 }
  0x75   : > { %s263_s6 = scalar_lea.vmem [#allocation3], %s664_s16  ;;  %p1318_p10 = pnand %p788_p5, %p1281_p3 }
  0x76   : > { %s270_s27 = sshll.u32 %s263_s6, 4  ;;  %s260_s29 = scalar_lea.sflag [#allocation4], %s259_s15  ;;  %s1322_s27 = int_to_ptr.vmem [resolvable:$true] %s270_s27 }
  0x77   : > { %s963_s9 = scalar_lea.hbm %s1314_s28, 128  ;;  %p965_p11 = pneg %p1318_p10 }
  0x78   : > { %p964_p8 = scmp.ne.s32.totalorder %s1314_s28, %s963_s9  ;;  %s968_s7 = scalar_lea.hbm %s1432_s0, 256 }
  0x79   : > { %p969_p3 = scmp.lt.u32.totalorder %s1314_s28, %s1432_s0  ;;  %p970_p6 = scmp.lt.u32.totalorder %s968_s7, %s963_s9 }
  0x7a   : > { %p966_p1 = pnand %p965_p11, %p964_p8  ;;  %p972_p0 = scmp.lt.u32.totalorder %s963_s9, %s1314_s28 }
  0x7b   : > { %p971_p13 = por %p970_p6, %p969_p3 }
  0x7c   : > { %p967_p12 = pneg %p966_p1 }
  0x7d   : > { %p973_p7 = por %p972_p0, %p971_p13 }
  0x7f   : > { %p974_p5 = pnand %p973_p7, %p967_p12 }
  0x81   : > { %977 = shalt.err (!%p974_p5)
}
  0x82   : > { %s978_s15 = scalar_lea.vmem %s1322_s27, 128  ;;  %s1091_s6 = smov [#allocation3]  }
  0x83   : > { %p979_p8 = scmp.ne.s32.totalorder %s1322_s27, %s978_s15  ;;  %s983_s24 = sshll.u32 %s1091_s6, 4  ;;  %s984_s24 = int_to_ptr.vmem [resolvable:$false] %s983_s24 }
  0x84   : > { %s985_s16 = scalar_lea.vmem %s984_s24, 256  ;;  %p986_p4 = scmp.lt.s32.totalorder %s1322_s27, %s984_s24 }
  0x85   : > { %p981_p1 = pnand %p979_p8, %p965_p11  ;;  %p987_p3 = scmp.lt.s32.totalorder %s985_s16, %s978_s15 }
  0x87   : > { %p982_p9 = pneg %p981_p1  ;;  %p988_p6 = por %p987_p3, %p986_p4 }
  0x89   : > { %p989_p13 = pnand %p988_p6, %p982_p9 }
  0x8b   : > { %992 = shalt.err (!%p989_p13)
}
  0x8c   : > { %779 = dma.hbm_to_vmem [thread:$0]  (!%p1318_p10), %s1314_s28, 128, %s1322_s27, %s260_s29  }
  0x8d   : > { %p1452_p12 = scmp.ne.s32.totalorder %s1443_s26, 0 }
  0x8e   : > { %s1352_s9 = sand.u32 (!%p1452_p12), 1, %s1067_s19  }
  0x8f   : > { %279 = sbr.rel (%p1452_p12) target bundleno = 621 (0x26d), region = 40  ;;  %s667_s7 = sshll.u32 (!%p1452_p12), %s1352_s9, 3 }
  0x90   : > { %s282_s17 = scalar_lea.sflag (!%p1452_p12), [#allocation4], %s1352_s9  ;;  %s1358_s8 = scalar_lea.vmem (!%p1452_p12), [#allocation3], %s667_s7 }
  0x96   : > { %1046 = dma.done.wait (%p1293_p2), %s282_s17, 128  }
  0x97   : > { %1048 = vsyncadd (%p1293_p2), %s282_s17, 4294967168  ;;  %p1453_p4 = scmp.ne.s32.totalorder %s1442_s25, 0 }
  0x99   : > { %1050 = dma.done.wait (%p1453_p4), [#allocation7], 528  }
  0x9a   : > { %1052 = vsyncadd (%p1453_p4), [#allocation7], 4294966768 }
  0x9b   : > { %1054 = dma.done.wait (%p1453_p4), [#allocation10], 1040  }
  0x9c   : > { %1056 = vsyncadd (%p1453_p4), [#allocation10], 4294966256  ;;  %vm333_vm0 = vcmask 261120   ;;  %v1092_v0 = vmov 0.0|0.0   ;;  %vm1093_vm1 = vmmov 0   ;;  %v1094_v1 = vmov 0.0  }
  0x9d   : > { %725 = vmatprep.subr.bf16.mxu0 %v1092_v0  ;;  %703 = vmatprep.mubr.msk.f32.mxu0 %vm1093_vm1, %v1094_v1  ;;  %334 = vst.msk [vmem:[#allocation2] sm:$0xff] %vm333_vm0, %v1094_v1  ;;  %v336_v2 = vld [vmem:[#allocation6] sm:$0xff]  ;;  %v337_v3 = vld [vmem:[#allocation6 + $0x8] sm:$0xff]  ;;  %v338_v4 = vld [vmem:[#allocation6 + $0x10] sm:$0xff]  ;;  %vm431_vm2 = vcmask 523264   ;;  %s678_s25 = sshll.u32 %s1075_s21, 7 }
  0x9e   : > { %731 = vmatprep.subr.bf16.mxu1 %v1092_v0  ;;  %722 = vmatprep.mubr.msk.f32.mxu1 %vm1093_vm1, %v1094_v1  ;;  %v726_v5 = vpack.c.bf16 %v337_v3, %v336_v2  ;;  %v339_v6 = vld [vmem:[#allocation6 + $0x18] sm:$0xff]  ;;  %v423_v7 = vld [vmem:[#allocation9] sm:$0xff]  ;;  %v424_v8 = vld [vmem:[#allocation9 + $0x8] sm:$0xff]  ;;  %s327_s26 = scalar_lea.vmem [#allocation12], %s667_s7  ;;  %s1382_s14 = scalar_lea.hbm %s1437_s5, %s678_s25 }
  0x9f   : > { %v425_v9 = vld [vmem:[#allocation9 + $0x10] sm:$0xff]  ;;  %v426_v10 = vld [vmem:[#allocation9 + $0x18] sm:$0xff]  ;;  %v729_v11 = vpack.c.bf16 %v339_v6, %v338_v4  ;;  %v732_v12 = vpack.c.bf16 %v424_v8, %v423_v7  ;;  %v427_v14 = vld [vmem:[#allocation9 + $0x20] sm:$0xff]  ;;  %s534_s10 = sshll.u32 %s327_s26, 4  ;;  %s521_s29 = scalar_lea.sflag [#allocation5], %s1352_s9  ;;  %s1384_s10 = int_to_ptr.vmem [resolvable:$true] %s534_s10 }
  0xa0   : > { %727 = vmatpush3.bf16.msra.mxu0 %v726_v5  ;;  %v735_v13 = vpack.c.bf16 %v426_v10, %v425_v9  ;;  %v428_v15 = vld [vmem:[#allocation9 + $0x28] sm:$0xff]  ;;  %v429_v18 = vld [vmem:[#allocation9 + $0x30] sm:$0xff]  ;;  %v430_v19 = vld [vmem:[#allocation9 + $0x38] sm:$0xff]  ;;  %s993_s15 = scalar_lea.vmem %s1384_s10, 128  ;;  %p1454_p9 = scmp.ne.s32.totalorder %s1449_s11, 0 }
  0xa1   : > { %728 = vmatprep.subr.bf16.mxu0 %v1092_v0  ;;  %733 = vmatpush3.bf16.msra.mxu1 %v732_v12  ;;  %v335_v16 = vld [vmem:[%s1358_s8] sm:$0xff]  ;;  %v738_v17 = vpack.c.bf16 %v428_v15, %v427_v14  ;;  %v741_v20 = vpack.c.bf16 %v430_v19, %v429_v18  ;;  %v673_v21 = vld [vmem:[#allocation8] ss:$0 sm:$0xff]  ;;  %v676_v30 = vld [vmem:[#allocation11] ss:$0 sm:$0xff]  ;;  %p994_p2 = scmp.ne.s32.totalorder %s1384_s10, %s993_s15  ;;  %s1095_s21 = smov [#allocation12]  }
  0xa2   : > { %734 = vmatprep.subr.bf16.mxu1 %v1092_v0  ;;  %s997_s6 = sshll.u32 %s1095_s21, 4  ;;  %s998_s6 = int_to_ptr.vmem [resolvable:$false] %s997_s6 }
  0xa3   : > { %p995_p10 = pnand %p994_p2, %p1454_p9  ;;  %s999_s24 = scalar_lea.vmem %s998_s6, 256 }
  0xa4   : > { %730 = vmatpush3.bf16.msra.mxu0 %v729_v11  ;;  %v422_v26 = vld [vmem:[#allocation2] sm:$0xff]  ;;  %p1000_p0 = scmp.lt.s32.totalorder %s1384_s10, %s998_s6  ;;  %p1001_p7 = scmp.lt.s32.totalorder %s999_s24, %s993_s15 }
  0xa5   : > { %736 = vmatpush3.bf16.msra.mxu1 %v735_v13  ;;  %p996_p11 = pneg %p995_p10 }
  0xa6   : > { %737 = vmatprep.subr.bf16.mxu1 %v1092_v0  ;;  %p1002_p5 = por %p1001_p7, %p1000_p0 }
  0xa7   : > { %704 = vmatmul.mubr.msk.f32.vlgmr.msra.gmra.mrb[0].mxu0 %vm333_vm0, %v335_v16 }
  0xa8   : > { %p1003_p8 = pnand %p1002_p5, %p996_p11 }
  0xa9   : > { %739 = vmatpush3.bf16.msra.mxu1 %v738_v17 }
  0xaa   : > { %740 = vmatprep.subr.bf16.mxu1 %v1092_v0 }
  0xad   : > { %742 = vmatpush3.bf16.msra.mxu1 %v741_v20 }
 0x17a   : > { %v417_v22 = vpop.f32.mrb[0].mxu0 }
 0x17b   : > { %v418_v23 = vadd.f32 %v673_v21, %v417_v22  ;;  %v705_v24 = vpop.f32.mrb[1].mxu0 }
 0x17d   : > { %v421_v25 = vmax.f32 %v418_v23, 0.0 }
 0x17f   : > { %723 = vmatmul.mubr.msk.f32.vlgmr.msra.gmra.mrb[0].mxu1 %vm431_vm2, %v421_v25 }
 0x252   : > { %v501_v27 = vpop.f32.mrb[0].mxu1 }
 0x253   : > { %v505_v28 = vadd.f32 %v501_v27, %v422_v26  ;;  %v724_v29 = vpop.f32.mrb[1].mxu1 }
 0x255   : > { %506 = vst.msk [vmem:[#allocation2] sm:$0xff] %vm333_vm0, %v505_v28 }
 0x25c   : > { %v510_v31 = vld [vmem:[#allocation2] sm:$0xff] }
 0x25d   : > { %v518_v32 = vadd.f32 %v676_v30, %v510_v31 }
 0x25f   : > { %519 = vst.msk [vmem:[%s327_s26] sm:$0xff] %vm333_vm0, %v518_v32 }
 0x260   : > { %1006 = shalt.err (!%p1003_p8)
}
 0x261   : > { %s1007_s16 = scalar_lea.hbm %s1382_s14, 128  ;;  %s1011_s17 = scalar_lea.hbm %s1437_s5, 256 }
 0x262   : > { %p1008_p1 = scmp.ne.s32.totalorder %s1382_s14, %s1007_s16  ;;  %p1012_p13 = scmp.lt.u32.totalorder %s1382_s14, %s1437_s5 }
 0x263   : > { %p1013_p12 = scmp.lt.u32.totalorder %s1011_s17, %s1007_s16  ;;  %p1015_p2 = scmp.lt.u32.totalorder %s1007_s16, %s1382_s14 }
 0x264   : > { %p1009_p3 = pnand %p1008_p1, %p1454_p9 }
 0x265   : > { %p1014_p4 = por %p1013_p12, %p1012_p13 }
 0x266   : > { %p1010_p6 = pneg %p1009_p3 }
 0x267   : > { %p1016_p10 = por %p1015_p2, %p1014_p4 }
 0x269   : > { %p1017_p11 = pnand %p1016_p10, %p1010_p6 }
 0x26b   : > { %1020 = shalt.err (!%p1017_p11)
}
 0x26c   : > { %761 = dma.vmem_to_hbm [thread:$0]  (%p1454_p9), %s1384_s10, 128, %s1382_s14, %s521_s29  }
 0x26d PF: > { %s546_s26 = sand.u32 1, %s1063_s18   ;;  %p1455_p0 = scmp.ne.s32.totalorder %s1450_s13, 0 }
 0x26e   : > { %p1456_p7 = scmp.ge.s32.totalorder %s1083_s23, 2  ;;  %s547_s28 = scalar_lea.sflag [#allocation5], %s546_s26 }
 0x270   : > { %p781_p5 = pnand %p1456_p7, %p1455_p0 }
 0x272   : > { %1058 = dma.done.wait (!%p781_p5), %s547_s28, 128  }
 0x273   : > { %1060 = vsyncadd (!%p781_p5), %s547_s28, 4294967168  ;;  %s23_s23 = sadd.s32 1, %s1083_s23   ;;  %s1457_s18 = smov %s1067_s19 }
 0x274   : > { %p20_p8 = scmp.ge.s32.totalorder %s23_s23, 4   ;;  %s1458_s19 = smov %s1071_s20 }
 0x275   : > { %s1459_s20 = smov %s1302_s12  ;;  %s1460_s21 = smov %s1079_s22 }
 0x276   : > { %s1461_s22 = smov %s1463_s30  ;;  %22 = sbr.rel (!%p20_p8) target bundleno = 8 (0x8), region = 112 }
 0x27d   :  { %552 = vsyncpa [#allocation4], 1 }
 0x27e   :  { %554 = vsyncpa [#allocation4 + $0x1], 1 }
 0x27f   :  { %555 = vsyncpa [#allocation7], 1 }
 0x280   :  { %556 = vsyncpa [#allocation10], 1 }
 0x281   :  { %557 = vsyncpa [#allocation5], 1 }
 0x282   :  { %559 = vsyncpa [#allocation5 + $0x1], 1 }

</bundles_post_ra>
